<compile_context>
chip_gen: v5e
topology: v5e:2x2
jax: 0.10.0
libtpu: 0.0.40
codegen_flags: <defaults>
</compile_context>

<pallas_src>
import jax
import jax.numpy as jnp
from jax.experimental import pallas as pl
from jax.experimental.pallas import tpu as pltpu


_LANE = 128
_SMALL_N = 32 * 1024                   # below this, the fused XLA reshape wins
_TARGET_BLOCK_BYTES = 2 * 1024 * 1024  # per-buffer tile (x4 with double-buffering)
_WIDTH_CANDIDATES = (32768, 16384, 8192, 4096, 2048, 1024, 512, 256, 128)


def _copy_kernel(x_ref, o_ref):
    # Reshape has no math: pure streaming copy of the current tile.
    o_ref[...] = x_ref[...]


def _pallas_copy_2d(x2d):
    """Identity copy of a [rows, width] slab through a tiled Pallas kernel."""
    rows, width = x2d.shape
    itemsize = jnp.dtype(x2d.dtype).itemsize
    # Sublane multiple for the second-to-last block dim (dtype packing):
    # f32 -> 8, bf16/f16 -> 16, int8/fp8 -> 32.
    sub = max(8, 8 * (4 // max(1, itemsize)))

    if rows <= sub:
        # Full-dim block is always legal regardless of the (8,128) rule.
        tr = rows
    else:
        tr = (_TARGET_BLOCK_BYTES // (width * itemsize)) // sub * sub
        tr = max(sub, min(tr, (rows // sub) * sub))
        # Keep >= 2 grid steps when possible so the "parallel" axis can be
        # sharded across the 2 TensorCores on v7x (neutral on v5e/v6e).
        if tr >= rows and rows >= 2 * sub:
            tr = max(sub, ((rows // 2) // sub) * sub)

    nbytes = rows * width * itemsize

    return pl.pallas_call(
        _copy_kernel,
        out_shape=jax.ShapeDtypeStruct((rows, width), x2d.dtype),
        grid=(pl.cdiv(rows, tr),),
        in_specs=[pl.BlockSpec((tr, width), lambda i: (i, 0))],
        out_specs=pl.BlockSpec((tr, width), lambda i: (i, 0)),
        compiler_params=pltpu.CompilerParams(
            dimension_semantics=("parallel",),
        ),
        cost_estimate=pl.CostEstimate(
            flops=0, transcendentals=0, bytes_accessed=2 * nbytes),
    )(x2d)


def reshape_forward(x, shape_out):
    """Pallas implementation of Reshape.forward: x.reshape((batch,) + shape_out)."""
    out_shape = (x.shape[0],) + tuple(shape_out)
    n = x.size
    out_n = 1
    for d in out_shape:
        out_n *= d
    assert out_n == n, "shape_out incompatible with input size"

    # Fast path: empty / tiny tensors, or element counts not lane-aligned.
    # jnp.reshape is metadata-only for row-major arrays, so this is exact.
    if n == 0 or n < _SMALL_N or n % _LANE != 0:
        return jnp.reshape(x, out_shape)

    # Lane-dense 2D view: widest last dim (multiple of 128) that divides n.
    width = _LANE
    for w in _WIDTH_CANDIDATES:
        if n % w == 0:
            width = w
            break
    rows = n // width

    x2d = jnp.reshape(x, (rows, width))   # metadata-only, no HBM copy
    out2d = _pallas_copy_2d(x2d)
    return jnp.reshape(out2d, out_shape)  # metadata-only, no HBM copy


if __name__ == "__main__":
    key = jax.random.PRNGKey(0)
    k1, k2, k3 = jax.random.split(key, 3)

    # Small example consistent with the module (fused fast path).
    x_small = jax.random.normal(k1, (2, 4, 16, 16), dtype=jnp.float32)
    y_small = jax.block_until_ready(reshape_forward(x_small, (4, 16 * 16)))
    assert y_small.shape == (2, 4, 256)
    assert y_small.dtype == x_small.dtype
    assert jnp.array_equal(y_small, jnp.reshape(x_small, (2, 4, 256)))

    # Larger f32 example that exercises the Pallas streaming-copy kernel path.
    x_big = jax.random.normal(k2, (2, 8, 128, 256), dtype=jnp.float32)
    y_big = jax.block_until_ready(reshape_forward(x_big, (8 * 128, 256)))
    assert y_big.shape == (2, 1024, 256)
    assert y_big.dtype == x_big.dtype
    assert jnp.array_equal(y_big, jnp.reshape(x_big, (2, 1024, 256)))

    # bf16 example to exercise dtype-dependent sublane packing in the kernel.
    x_bf16 = jax.random.normal(k3, (2, 4, 64, 512), dtype=jnp.bfloat16)
    y_bf16 = jax.block_until_ready(reshape_forward(x_bf16, (4 * 64, 512)))
    assert y_bf16.shape == (2, 256, 512)
    assert y_bf16.dtype == x_bf16.dtype
    assert jnp.array_equal(y_bf16, jnp.reshape(x_bf16, (2, 256, 512)))

    print("KERNEL_OK")
</pallas_src>

<mosaic_0001>
module attributes {stable_mosaic.version = 11 : i64} {
  func.func @_copy_kernel(%arg0: i32, %arg1: memref<8x32768xf32, #tpu.memory_space<vmem>>, %arg2: memref<8x32768xf32, #tpu.memory_space<vmem>>) attributes {dimension_semantics = [#tpu.dimension_semantics<parallel>], iteration_bounds = array<i64: 2>, scalar_prefetch = 0 : i64, scratch_operands = 0 : i64, tpu.core_type = #tpu.core_type<tc>, window_params = [{transform_indices = @transform_0, window_bounds = array<i64: 8, 32768>}, {transform_indices = @transform_1, window_bounds = array<i64: 8, 32768>}]} {
    %c0 = arith.constant 0 : index
    %c0_0 = arith.constant 0 : index
    %0 = vector.load %arg1[%c0, %c0_0] : memref<8x32768xf32, #tpu.memory_space<vmem>>, vector<8x32768xf32>
    %c0_1 = arith.constant 0 : index
    %c0_2 = arith.constant 0 : index
    %1 = vector.load %arg2[%c0_1, %c0_2] : memref<8x32768xf32, #tpu.memory_space<vmem>>, vector<8x32768xf32>
    tpu.vector_store %arg2[%c0_1, %c0_2], %0 {strides = array<i32>} : memref<8x32768xf32, #tpu.memory_space<vmem>>, vector<8x32768xf32>,
    return
  }
  func.func @transform_0(%arg0: i32) -> (i32, i32) {
    %c0_i32 = arith.constant 0 : i32
    %c0_i32_0 = arith.constant 0 : i32
    return %arg0, %c0_i32 : i32, i32
  }
  func.func @transform_1(%arg0: i32) -> (i32, i32) {
    %c0_i32 = arith.constant 0 : i32
    %c0_i32_0 = arith.constant 0 : i32
    return %arg0, %c0_i32 : i32, i32
  }
}

</mosaic_0001>

<bundles_post_ra>
// kernel: tpu_custom_call.1
= control target key start
LH: loop header
LB: loop body
LE: loop exit
PB: predicated region body
PF: predicated region fallthrough
CT: control target
= control target key end

     0   :  { %6 = vsyncpa [#allocation3], 0  ;;  %s1548_s0 = inlined_call_operand.hbm [shape: f32[16,32768], index: 0, kind: input, shape index: {}]   ;;  %s1549_s1 = inlined_call_operand.hbm [shape: f32[16,32768], index: 1, kind: output, shape index: {}]  }
   0x1   :  { %8 = vsyncpa [#allocation3 + $0x1], 0 }
   0x2   :  { %9 = vsyncpa [#allocation4], 0 }
   0x3   :  { %11 = vsyncpa [#allocation4 + $0x1], 0  ;;  %s904_s6 = smov 0   ;;  %s906_s7 = smov 0  }
   0x4   :  { %s908_s8 = smov 0   ;;  %s910_s9 = smov 0  }
   0x5 LB: > { %s925_s10 = sadd.s32 4294967295, %s892_s9   ;;  %s734_s11 = sadd.s32 4294967294, %s892_s9   ;;  %s892_s9 = sphi %s910_s9, %s1559_s9   ;;  %s888_s8 = sphi %s908_s8, %s1558_s8   ;;  %s884_s7 = sphi %s906_s7, %s1557_s7   ;;  %s880_s6 = sphi %s904_s6, %s1556_s6  }
   0x6   : > { %s929_s12 = sadd.s32 1, %s892_s9   ;;  %s24_s13 = sadd.s32 1, %s888_s8 }
   0x7   : > { %s21_s14 = ssub.s32 %s892_s9, %s929_s12  ;;  %p31_p0 = scmp.ne.s32.totalorder %s888_s8, %s884_s7 }
   0x8   : > { %p22_p1 = scmp.eq.s32.totalorder %s21_s14, 0  ;;  %p32_p2 = scmp.eq.s32.totalorder %s892_s9, 0 }
   0x9   : > { %p37_p3 = scmp.ne.s32.totalorder %s884_s7, %s880_s6  ;;  %p38_p4 = scmp.eq.s32.totalorder %s925_s10, 0 }
   0xa   : > { %s941_s15 = scalar_select %p22_p1, %s888_s8, %s24_s13  }
   0xb   : > { %p943_p5 = por %p32_p2, %p31_p0  ;;  %p947_p6 = por %p38_p4, %p37_p3 }
   0xc   : > { %p61_p7 = scmp.eq.s32.totalorder %s925_s10, 1  ;;  %p67_p8 = scmp.eq.s32.totalorder %s734_s11, 1 }
   0xd   : > { %p762_p10 = scmp.lt.s32.totalorder %s892_s9, 2  ;;  %s87_s20 = sand.u32 1, %s888_s8  }
   0xe   : > { %p954_p11 = por %p61_p7, %p31_p0  ;;  %p958_p12 = por %p67_p8, %p37_p3 }
   0xf   : > { %s748_s21 = sshll.u32 %s892_s9, 11  ;;  %s737_s22 = sshll.u32 %s87_s20, 11 }
  0x10   : > { %s96_s25 = scalar_lea.hbm %s1548_s0, %s748_s21  ;;  %s91_s27 = scalar_lea.vmem [#allocation2], %s737_s22 }
  0x11   : > { %s98_s26 = sshll.u32 %s96_s25, 4  ;;  %s100_s28 = sshll.u32 %s91_s27, 4  ;;  %s99_s26 = int_to_ptr.hbm [resolvable:$true] %s98_s26  ;;  %s101_s28 = int_to_ptr.vmem [resolvable:$true] %s100_s28 }
  0x12   : > { %p969_p13 = pnand %p762_p10, %p943_p5  ;;  %p740_p0 = scmp.ge.s32.totalorder %s892_s9, 1 }
  0x13   : > { %p105_p1 = scmp.lt.s32.totalorder %s892_s9, 3  ;;  %s88_s30 = scalar_lea.sflag [#allocation3], %s87_s20 }
  0x14   : > { %s796_s2 = sshra.s32 %s99_s26, 4  ;;  %p800_p3 = pneg %p969_p13  ;;  %s797_s2 = int_to_ptr.hbm [resolvable:$true] %s796_s2 }
  0x15   : > { %s798_s3 = scalar_lea.hbm %s797_s2, 2048  ;;  %s803_s11 = scalar_lea.hbm %s1548_s0, 4096 }
  0x16   : > { %p799_p2 = scmp.ne.s32.totalorder %s797_s2, %s798_s3  ;;  %p804_p5 = scmp.lt.s32.totalorder %s797_s2, %s1548_s0 }
  0x17   : > { %p805_p8 = scmp.lt.s32.totalorder %s803_s11, %s798_s3 }
  0x18   : > { %p801_p4 = pnand %p800_p3, %p799_p2 }
  0x19   : > { %p806_p10 = por %p805_p8, %p804_p5 }
  0x1a   : > { %p802_p7 = pneg %p801_p4 }
  0x1c   : > { %p807_p9 = pnand %p806_p10, %p802_p7 }
  0x1e   : > { %810 = shalt.err (!%p807_p9)
}
  0x1f   : > { %757 = dma.hbm_to_vmem [thread:$0]  (!%p969_p13), %s99_s26, 32768, %s101_s28, %s88_s30  }
  0x20   : > { %p106_p2 = pnand %p740_p0, %p105_p1 }
  0x21   : > { %s990_s16 = sand.u32 (!%p106_p2), 1, %s884_s7  }
  0x22   : > { %109 = sbr.rel (%p106_p2) target bundleno = 299 (0x12b), region = 24  ;;  %s741_s20 = sshll.u32 (!%p106_p2), %s990_s16, 11 }
  0x23   : > { %s112_s21 = scalar_lea.sflag (!%p106_p2), [#allocation3], %s990_s16  ;;  %s994_s22 = scalar_lea.vmem (!%p106_p2), [#allocation2], %s741_s20 }
  0x27   : > { %871 = dma.done.wait (%p947_p6), %s112_s21, 32768  }
  0x28   : > { %873 = vsyncadd (%p947_p6), %s112_s21, 4294934528  ;;  %v135_v0 = vld [vmem:[%s994_s22] sm:$0xff]  ;;  %v136_v1 = vld [vmem:[%s994_s22 + $0x8] sm:$0xff]  ;;  %s1003_s23 = scalar_lea.vmem [#allocation5], %s741_s20  ;;  %s749_s17 = sshll.u32 %s925_s10, 11 }
  0x29   : > { %v137_v2 = vld [vmem:[%s994_s22 + $0x10] sm:$0xff]  ;;  %391 = vst [vmem:[%s1003_s23] sm:$0xff] %v135_v0  ;;  %v138_v3 = vld [vmem:[%s994_s22 + $0x18] sm:$0xff]  ;;  %v139_v4 = vld [vmem:[%s994_s22 + $0x20] sm:$0xff]  ;;  %s659_s26 = scalar_lea.hbm %s1549_s1, %s749_s17  ;;  %s661_s10 = sshll.u32 %s1003_s23, 4  ;;  %s662_s10 = int_to_ptr.vmem [resolvable:$true] %s661_s10 }
  0x2a   : > { %392 = vst [vmem:[%s1003_s23 + $0x8] sm:$0xff] %v136_v1  ;;  %v140_v5 = vld [vmem:[%s994_s22 + $0x28] sm:$0xff]  ;;  %v141_v6 = vld [vmem:[%s994_s22 + $0x30] sm:$0xff]  ;;  %v142_v7 = vld [vmem:[%s994_s22 + $0x38] sm:$0xff]  ;;  %s663_s27 = sshll.u32 %s659_s26, 4  ;;  %s648_s28 = scalar_lea.sflag [#allocation4], %s990_s16  ;;  %s664_s27 = int_to_ptr.hbm [resolvable:$true] %s663_s27 }
  0x2b   : > { %393 = vst [vmem:[%s1003_s23 + $0x10] sm:$0xff] %v137_v2  ;;  %v143_v8 = vld [vmem:[%s994_s22 + $0x40] sm:$0xff]  ;;  %v144_v9 = vld [vmem:[%s994_s22 + $0x48] sm:$0xff]  ;;  %v145_v10 = vld [vmem:[%s994_s22 + $0x50] sm:$0xff]  ;;  %s840_s29 = sshra.s32 %s664_s27, 4  ;;  %s846_s4 = scalar_lea.hbm %s1549_s1, 4096  ;;  %s841_s29 = int_to_ptr.hbm [resolvable:$true] %s840_s29 }
  0x2c   : > { %394 = vst [vmem:[%s1003_s23 + $0x18] sm:$0xff] %v138_v3  ;;  %v146_v11 = vld [vmem:[%s994_s22 + $0x58] sm:$0xff]  ;;  %v147_v12 = vld [vmem:[%s994_s22 + $0x60] sm:$0xff]  ;;  %v148_v13 = vld [vmem:[%s994_s22 + $0x68] sm:$0xff]  ;;  %s842_s30 = scalar_lea.hbm %s841_s29, 2048  ;;  %p847_p0 = scmp.lt.s32.totalorder %s841_s29, %s1549_s1 }
  0x2d   : > { %395 = vst [vmem:[%s1003_s23 + $0x20] sm:$0xff] %v139_v4  ;;  %v149_v14 = vld [vmem:[%s994_s22 + $0x70] sm:$0xff]  ;;  %v150_v15 = vld [vmem:[%s994_s22 + $0x78] sm:$0xff]  ;;  %v151_v16 = vld [vmem:[%s994_s22 + $0x80] sm:$0xff]  ;;  %p843_p6 = scmp.ne.s32.totalorder %s841_s29, %s842_s30  ;;  %p848_p1 = scmp.lt.s32.totalorder %s846_s4, %s842_s30 }
  0x2e   : > { %396 = vst [vmem:[%s1003_s23 + $0x28] sm:$0xff] %v140_v5  ;;  %v152_v17 = vld [vmem:[%s994_s22 + $0x88] sm:$0xff]  ;;  %v153_v18 = vld [vmem:[%s994_s22 + $0x90] sm:$0xff]  ;;  %v154_v19 = vld [vmem:[%s994_s22 + $0x98] sm:$0xff] }
  0x2f   : > { %397 = vst [vmem:[%s1003_s23 + $0x30] sm:$0xff] %v141_v6  ;;  %v155_v20 = vld [vmem:[%s994_s22 + $0xa0] sm:$0xff]  ;;  %v156_v21 = vld [vmem:[%s994_s22 + $0xa8] sm:$0xff]  ;;  %v157_v22 = vld [vmem:[%s994_s22 + $0xb0] sm:$0xff]  ;;  %p844_p9 = pnand %p843_p6, %p954_p11  ;;  %p849_p3 = por %p848_p1, %p847_p0 }
  0x30   : > { %398 = vst [vmem:[%s1003_s23 + $0x38] sm:$0xff] %v142_v7  ;;  %v158_v23 = vld [vmem:[%s994_s22 + $0xb8] sm:$0xff]  ;;  %v159_v24 = vld [vmem:[%s994_s22 + $0xc0] sm:$0xff]  ;;  %v160_v25 = vld [vmem:[%s994_s22 + $0xc8] sm:$0xff] }
  0x31   : > { %399 = vst [vmem:[%s1003_s23 + $0x40] sm:$0xff] %v143_v8  ;;  %v161_v26 = vld [vmem:[%s994_s22 + $0xd0] sm:$0xff]  ;;  %v162_v27 = vld [vmem:[%s994_s22 + $0xd8] sm:$0xff]  ;;  %v163_v28 = vld [vmem:[%s994_s22 + $0xe0] sm:$0xff]  ;;  %p845_p13 = pneg %p844_p9 }
  0x32   : > { %400 = vst [vmem:[%s1003_s23 + $0x48] sm:$0xff] %v144_v9  ;;  %v164_v29 = vld [vmem:[%s994_s22 + $0xe8] sm:$0xff]  ;;  %v165_v30 = vld [vmem:[%s994_s22 + $0xf0] sm:$0xff]  ;;  %v166_v31 = vld [vmem:[%s994_s22 + $0xf8] sm:$0xff] }
  0x33   : > { %401 = vst [vmem:[%s1003_s23 + $0x50] sm:$0xff] %v145_v10  ;;  %v167_v32 = vld [vmem:[%s994_s22 + $0x100] sm:$0xff]  ;;  %v168_v33 = vld [vmem:[%s994_s22 + $0x108] sm:$0xff]  ;;  %v169_v34 = vld [vmem:[%s994_s22 + $0x110] sm:$0xff]  ;;  %p850_p4 = pnand %p849_p3, %p845_p13 }
  0x34   : > { %402 = vst [vmem:[%s1003_s23 + $0x58] sm:$0xff] %v146_v11  ;;  %v170_v35 = vld [vmem:[%s994_s22 + $0x118] sm:$0xff]  ;;  %v171_v36 = vld [vmem:[%s994_s22 + $0x120] sm:$0xff]  ;;  %v172_v37 = vld [vmem:[%s994_s22 + $0x128] sm:$0xff] }
  0x35   : > { %403 = vst [vmem:[%s1003_s23 + $0x60] sm:$0xff] %v147_v12  ;;  %v173_v38 = vld [vmem:[%s994_s22 + $0x130] sm:$0xff]  ;;  %v174_v39 = vld [vmem:[%s994_s22 + $0x138] sm:$0xff]  ;;  %v175_v40 = vld [vmem:[%s994_s22 + $0x140] sm:$0xff] }
  0x36   : > { %404 = vst [vmem:[%s1003_s23 + $0x68] sm:$0xff] %v148_v13  ;;  %v176_v41 = vld [vmem:[%s994_s22 + $0x148] sm:$0xff]  ;;  %v177_v42 = vld [vmem:[%s994_s22 + $0x150] sm:$0xff]  ;;  %v178_v43 = vld [vmem:[%s994_s22 + $0x158] sm:$0xff] }
  0x37   : > { %405 = vst [vmem:[%s1003_s23 + $0x70] sm:$0xff] %v149_v14  ;;  %v179_v44 = vld [vmem:[%s994_s22 + $0x160] sm:$0xff]  ;;  %v180_v45 = vld [vmem:[%s994_s22 + $0x168] sm:$0xff]  ;;  %v181_v46 = vld [vmem:[%s994_s22 + $0x170] sm:$0xff] }
  0x38   : > { %406 = vst [vmem:[%s1003_s23 + $0x78] sm:$0xff] %v150_v15  ;;  %v182_v47 = vld [vmem:[%s994_s22 + $0x178] sm:$0xff]  ;;  %v183_v48 = vld [vmem:[%s994_s22 + $0x180] sm:$0xff]  ;;  %v184_v49 = vld [vmem:[%s994_s22 + $0x188] sm:$0xff] }
  0x39   : > { %407 = vst [vmem:[%s1003_s23 + $0x80] sm:$0xff] %v151_v16  ;;  %v185_v50 = vld [vmem:[%s994_s22 + $0x190] sm:$0xff]  ;;  %v186_v51 = vld [vmem:[%s994_s22 + $0x198] sm:$0xff]  ;;  %v187_v52 = vld [vmem:[%s994_s22 + $0x1a0] sm:$0xff] }
  0x3a   : > { %408 = vst [vmem:[%s1003_s23 + $0x88] sm:$0xff] %v152_v17  ;;  %v188_v53 = vld [vmem:[%s994_s22 + $0x1a8] sm:$0xff]  ;;  %v189_v54 = vld [vmem:[%s994_s22 + $0x1b0] sm:$0xff]  ;;  %v190_v55 = vld [vmem:[%s994_s22 + $0x1b8] sm:$0xff] }
  0x3b   : > { %409 = vst [vmem:[%s1003_s23 + $0x90] sm:$0xff] %v153_v18  ;;  %v191_v56 = vld [vmem:[%s994_s22 + $0x1c0] sm:$0xff]  ;;  %v192_v57 = vld [vmem:[%s994_s22 + $0x1c8] sm:$0xff]  ;;  %v193_v58 = vld [vmem:[%s994_s22 + $0x1d0] sm:$0xff] }
  0x3c   : > { %410 = vst [vmem:[%s1003_s23 + $0x98] sm:$0xff] %v154_v19  ;;  %v194_v59 = vld [vmem:[%s994_s22 + $0x1d8] sm:$0xff]  ;;  %v195_v60 = vld [vmem:[%s994_s22 + $0x1e0] sm:$0xff]  ;;  %v196_v61 = vld [vmem:[%s994_s22 + $0x1e8] sm:$0xff] }
  0x3d   : > { %411 = vst [vmem:[%s1003_s23 + $0xa0] sm:$0xff] %v155_v20  ;;  %v197_v62 = vld [vmem:[%s994_s22 + $0x1f0] sm:$0xff]  ;;  %v198_v63 = vld [vmem:[%s994_s22 + $0x1f8] sm:$0xff]  ;;  %v199_v0 = vld [vmem:[%s994_s22 + $0x200] sm:$0xff] }
  0x3e   : > { %412 = vst [vmem:[%s1003_s23 + $0xa8] sm:$0xff] %v156_v21  ;;  %v200_v1 = vld [vmem:[%s994_s22 + $0x208] sm:$0xff]  ;;  %v201_v2 = vld [vmem:[%s994_s22 + $0x210] sm:$0xff]  ;;  %v202_v3 = vld [vmem:[%s994_s22 + $0x218] sm:$0xff] }
  0x3f   : > { %413 = vst [vmem:[%s1003_s23 + $0xb0] sm:$0xff] %v157_v22  ;;  %v203_v4 = vld [vmem:[%s994_s22 + $0x220] sm:$0xff]  ;;  %v204_v5 = vld [vmem:[%s994_s22 + $0x228] sm:$0xff]  ;;  %v205_v6 = vld [vmem:[%s994_s22 + $0x230] sm:$0xff] }
  0x40   : > { %414 = vst [vmem:[%s1003_s23 + $0xb8] sm:$0xff] %v158_v23  ;;  %v206_v7 = vld [vmem:[%s994_s22 + $0x238] sm:$0xff]  ;;  %v207_v8 = vld [vmem:[%s994_s22 + $0x240] sm:$0xff]  ;;  %v208_v9 = vld [vmem:[%s994_s22 + $0x248] sm:$0xff] }
  0x41   : > { %415 = vst [vmem:[%s1003_s23 + $0xc0] sm:$0xff] %v159_v24  ;;  %v209_v10 = vld [vmem:[%s994_s22 + $0x250] sm:$0xff]  ;;  %v210_v11 = vld [vmem:[%s994_s22 + $0x258] sm:$0xff]  ;;  %v211_v12 = vld [vmem:[%s994_s22 + $0x260] sm:$0xff] }
  0x42   : > { %416 = vst [vmem:[%s1003_s23 + $0xc8] sm:$0xff] %v160_v25  ;;  %v212_v13 = vld [vmem:[%s994_s22 + $0x268] sm:$0xff]  ;;  %v213_v14 = vld [vmem:[%s994_s22 + $0x270] sm:$0xff]  ;;  %v214_v15 = vld [vmem:[%s994_s22 + $0x278] sm:$0xff] }
  0x43   : > { %417 = vst [vmem:[%s1003_s23 + $0xd0] sm:$0xff] %v161_v26  ;;  %v215_v16 = vld [vmem:[%s994_s22 + $0x280] sm:$0xff]  ;;  %v216_v17 = vld [vmem:[%s994_s22 + $0x288] sm:$0xff]  ;;  %v217_v18 = vld [vmem:[%s994_s22 + $0x290] sm:$0xff] }
  0x44   : > { %418 = vst [vmem:[%s1003_s23 + $0xd8] sm:$0xff] %v162_v27  ;;  %v218_v19 = vld [vmem:[%s994_s22 + $0x298] sm:$0xff]  ;;  %v219_v20 = vld [vmem:[%s994_s22 + $0x2a0] sm:$0xff]  ;;  %v220_v21 = vld [vmem:[%s994_s22 + $0x2a8] sm:$0xff] }
  0x45   : > { %419 = vst [vmem:[%s1003_s23 + $0xe0] sm:$0xff] %v163_v28  ;;  %v221_v22 = vld [vmem:[%s994_s22 + $0x2b0] sm:$0xff]  ;;  %v222_v23 = vld [vmem:[%s994_s22 + $0x2b8] sm:$0xff]  ;;  %v223_v24 = vld [vmem:[%s994_s22 + $0x2c0] sm:$0xff] }
  0x46   : > { %420 = vst [vmem:[%s1003_s23 + $0xe8] sm:$0xff] %v164_v29  ;;  %v224_v25 = vld [vmem:[%s994_s22 + $0x2c8] sm:$0xff]  ;;  %v225_v26 = vld [vmem:[%s994_s22 + $0x2d0] sm:$0xff]  ;;  %v226_v27 = vld [vmem:[%s994_s22 + $0x2d8] sm:$0xff] }
  0x47   : > { %421 = vst [vmem:[%s1003_s23 + $0xf0] sm:$0xff] %v165_v30  ;;  %v227_v28 = vld [vmem:[%s994_s22 + $0x2e0] sm:$0xff]  ;;  %v228_v29 = vld [vmem:[%s994_s22 + $0x2e8] sm:$0xff]  ;;  %v229_v30 = vld [vmem:[%s994_s22 + $0x2f0] sm:$0xff] }
  0x48   : > { %422 = vst [vmem:[%s1003_s23 + $0xf8] sm:$0xff] %v166_v31  ;;  %v230_v31 = vld [vmem:[%s994_s22 + $0x2f8] sm:$0xff] }
  0x49   : > { %423 = vst [vmem:[%s1003_s23 + $0x100] sm:$0xff] %v167_v32  ;;  %v231_v32 = vld [vmem:[%s994_s22 + $0x300] sm:$0xff] }
  0x4a   : > { %424 = vst [vmem:[%s1003_s23 + $0x108] sm:$0xff] %v168_v33  ;;  %v232_v33 = vld [vmem:[%s994_s22 + $0x308] sm:$0xff] }
  0x4b   : > { %425 = vst [vmem:[%s1003_s23 + $0x110] sm:$0xff] %v169_v34  ;;  %v233_v34 = vld [vmem:[%s994_s22 + $0x310] sm:$0xff] }
  0x4c   : > { %426 = vst [vmem:[%s1003_s23 + $0x118] sm:$0xff] %v170_v35  ;;  %v234_v35 = vld [vmem:[%s994_s22 + $0x318] sm:$0xff] }
  0x4d   : > { %427 = vst [vmem:[%s1003_s23 + $0x120] sm:$0xff] %v171_v36  ;;  %v235_v36 = vld [vmem:[%s994_s22 + $0x320] sm:$0xff] }
  0x4e   : > { %428 = vst [vmem:[%s1003_s23 + $0x128] sm:$0xff] %v172_v37  ;;  %v236_v37 = vld [vmem:[%s994_s22 + $0x328] sm:$0xff] }
  0x4f   : > { %429 = vst [vmem:[%s1003_s23 + $0x130] sm:$0xff] %v173_v38  ;;  %v237_v38 = vld [vmem:[%s994_s22 + $0x330] sm:$0xff] }
  0x50   : > { %430 = vst [vmem:[%s1003_s23 + $0x138] sm:$0xff] %v174_v39  ;;  %v238_v39 = vld [vmem:[%s994_s22 + $0x338] sm:$0xff] }
  0x51   : > { %431 = vst [vmem:[%s1003_s23 + $0x140] sm:$0xff] %v175_v40  ;;  %v239_v40 = vld [vmem:[%s994_s22 + $0x340] sm:$0xff] }
  0x52   : > { %432 = vst [vmem:[%s1003_s23 + $0x148] sm:$0xff] %v176_v41  ;;  %v240_v41 = vld [vmem:[%s994_s22 + $0x348] sm:$0xff] }
  0x53   : > { %433 = vst [vmem:[%s1003_s23 + $0x150] sm:$0xff] %v177_v42  ;;  %v241_v42 = vld [vmem:[%s994_s22 + $0x350] sm:$0xff] }
  0x54   : > { %434 = vst [vmem:[%s1003_s23 + $0x158] sm:$0xff] %v178_v43  ;;  %v242_v43 = vld [vmem:[%s994_s22 + $0x358] sm:$0xff] }
  0x55   : > { %435 = vst [vmem:[%s1003_s23 + $0x160] sm:$0xff] %v179_v44  ;;  %v243_v44 = vld [vmem:[%s994_s22 + $0x360] sm:$0xff] }
  0x56   : > { %436 = vst [vmem:[%s1003_s23 + $0x168] sm:$0xff] %v180_v45  ;;  %v244_v45 = vld [vmem:[%s994_s22 + $0x368] sm:$0xff] }
  0x57   : > { %437 = vst [vmem:[%s1003_s23 + $0x170] sm:$0xff] %v181_v46  ;;  %v245_v46 = vld [vmem:[%s994_s22 + $0x370] sm:$0xff] }
  0x58   : > { %438 = vst [vmem:[%s1003_s23 + $0x178] sm:$0xff] %v182_v47  ;;  %v246_v47 = vld [vmem:[%s994_s22 + $0x378] sm:$0xff] }
  0x59   : > { %439 = vst [vmem:[%s1003_s23 + $0x180] sm:$0xff] %v183_v48  ;;  %v247_v48 = vld [vmem:[%s994_s22 + $0x380] sm:$0xff] }
  0x5a   : > { %440 = vst [vmem:[%s1003_s23 + $0x188] sm:$0xff] %v184_v49  ;;  %v248_v49 = vld [vmem:[%s994_s22 + $0x388] sm:$0xff] }
  0x5b   : > { %441 = vst [vmem:[%s1003_s23 + $0x190] sm:$0xff] %v185_v50  ;;  %v249_v50 = vld [vmem:[%s994_s22 + $0x390] sm:$0xff] }
  0x5c   : > { %442 = vst [vmem:[%s1003_s23 + $0x198] sm:$0xff] %v186_v51  ;;  %v250_v51 = vld [vmem:[%s994_s22 + $0x398] sm:$0xff] }
  0x5d   : > { %443 = vst [vmem:[%s1003_s23 + $0x1a0] sm:$0xff] %v187_v52  ;;  %v251_v52 = vld [vmem:[%s994_s22 + $0x3a0] sm:$0xff] }
  0x5e   : > { %444 = vst [vmem:[%s1003_s23 + $0x1a8] sm:$0xff] %v188_v53  ;;  %v252_v53 = vld [vmem:[%s994_s22 + $0x3a8] sm:$0xff] }
  0x5f   : > { %445 = vst [vmem:[%s1003_s23 + $0x1b0] sm:$0xff] %v189_v54  ;;  %v253_v54 = vld [vmem:[%s994_s22 + $0x3b0] sm:$0xff] }
  0x60   : > { %446 = vst [vmem:[%s1003_s23 + $0x1b8] sm:$0xff] %v190_v55  ;;  %v254_v55 = vld [vmem:[%s994_s22 + $0x3b8] sm:$0xff] }
  0x61   : > { %447 = vst [vmem:[%s1003_s23 + $0x1c0] sm:$0xff] %v191_v56  ;;  %v255_v56 = vld [vmem:[%s994_s22 + $0x3c0] sm:$0xff] }
  0x62   : > { %448 = vst [vmem:[%s1003_s23 + $0x1c8] sm:$0xff] %v192_v57  ;;  %v256_v57 = vld [vmem:[%s994_s22 + $0x3c8] sm:$0xff] }
  0x63   : > { %449 = vst [vmem:[%s1003_s23 + $0x1d0] sm:$0xff] %v193_v58  ;;  %v257_v58 = vld [vmem:[%s994_s22 + $0x3d0] sm:$0xff] }
  0x64   : > { %450 = vst [vmem:[%s1003_s23 + $0x1d8] sm:$0xff] %v194_v59  ;;  %v258_v59 = vld [vmem:[%s994_s22 + $0x3d8] sm:$0xff] }
  0x65   : > { %451 = vst [vmem:[%s1003_s23 + $0x1e0] sm:$0xff] %v195_v60  ;;  %v259_v60 = vld [vmem:[%s994_s22 + $0x3e0] sm:$0xff] }
  0x66   : > { %452 = vst [vmem:[%s1003_s23 + $0x1e8] sm:$0xff] %v196_v61  ;;  %v260_v61 = vld [vmem:[%s994_s22 + $0x3e8] sm:$0xff] }
  0x67   : > { %453 = vst [vmem:[%s1003_s23 + $0x1f0] sm:$0xff] %v197_v62  ;;  %v261_v62 = vld [vmem:[%s994_s22 + $0x3f0] sm:$0xff] }
  0x68   : > { %454 = vst [vmem:[%s1003_s23 + $0x1f8] sm:$0xff] %v198_v63  ;;  %v262_v63 = vld [vmem:[%s994_s22 + $0x3f8] sm:$0xff] }
  0x69   : > { %455 = vst [vmem:[%s1003_s23 + $0x200] sm:$0xff] %v199_v0  ;;  %v263_v0 = vld [vmem:[%s994_s22 + $0x400] sm:$0xff] }
  0x6a   : > { %456 = vst [vmem:[%s1003_s23 + $0x208] sm:$0xff] %v200_v1  ;;  %v264_v1 = vld [vmem:[%s994_s22 + $0x408] sm:$0xff] }
  0x6b   : > { %457 = vst [vmem:[%s1003_s23 + $0x210] sm:$0xff] %v201_v2  ;;  %v265_v2 = vld [vmem:[%s994_s22 + $0x410] sm:$0xff] }
  0x6c   : > { %458 = vst [vmem:[%s1003_s23 + $0x218] sm:$0xff] %v202_v3  ;;  %v266_v3 = vld [vmem:[%s994_s22 + $0x418] sm:$0xff] }
  0x6d   : > { %459 = vst [vmem:[%s1003_s23 + $0x220] sm:$0xff] %v203_v4  ;;  %v267_v4 = vld [vmem:[%s994_s22 + $0x420] sm:$0xff] }
  0x6e   : > { %460 = vst [vmem:[%s1003_s23 + $0x228] sm:$0xff] %v204_v5  ;;  %v268_v5 = vld [vmem:[%s994_s22 + $0x428] sm:$0xff] }
  0x6f   : > { %461 = vst [vmem:[%s1003_s23 + $0x230] sm:$0xff] %v205_v6  ;;  %v269_v6 = vld [vmem:[%s994_s22 + $0x430] sm:$0xff] }
  0x70   : > { %462 = vst [vmem:[%s1003_s23 + $0x238] sm:$0xff] %v206_v7  ;;  %v270_v7 = vld [vmem:[%s994_s22 + $0x438] sm:$0xff] }
  0x71   : > { %463 = vst [vmem:[%s1003_s23 + $0x240] sm:$0xff] %v207_v8  ;;  %v271_v8 = vld [vmem:[%s994_s22 + $0x440] sm:$0xff] }
  0x72   : > { %464 = vst [vmem:[%s1003_s23 + $0x248] sm:$0xff] %v208_v9  ;;  %v272_v9 = vld [vmem:[%s994_s22 + $0x448] sm:$0xff] }
  0x73   : > { %465 = vst [vmem:[%s1003_s23 + $0x250] sm:$0xff] %v209_v10  ;;  %v273_v10 = vld [vmem:[%s994_s22 + $0x450] sm:$0xff] }
  0x74   : > { %466 = vst [vmem:[%s1003_s23 + $0x258] sm:$0xff] %v210_v11  ;;  %v274_v11 = vld [vmem:[%s994_s22 + $0x458] sm:$0xff] }
  0x75   : > { %467 = vst [vmem:[%s1003_s23 + $0x260] sm:$0xff] %v211_v12  ;;  %v275_v12 = vld [vmem:[%s994_s22 + $0x460] sm:$0xff] }
  0x76   : > { %468 = vst [vmem:[%s1003_s23 + $0x268] sm:$0xff] %v212_v13  ;;  %v276_v13 = vld [vmem:[%s994_s22 + $0x468] sm:$0xff] }
  0x77   : > { %469 = vst [vmem:[%s1003_s23 + $0x270] sm:$0xff] %v213_v14  ;;  %v277_v14 = vld [vmem:[%s994_s22 + $0x470] sm:$0xff] }
  0x78   : > { %470 = vst [vmem:[%s1003_s23 + $0x278] sm:$0xff] %v214_v15  ;;  %v278_v15 = vld [vmem:[%s994_s22 + $0x478] sm:$0xff] }
  0x79   : > { %471 = vst [vmem:[%s1003_s23 + $0x280] sm:$0xff] %v215_v16  ;;  %v279_v16 = vld [vmem:[%s994_s22 + $0x480] sm:$0xff] }
  0x7a   : > { %472 = vst [vmem:[%s1003_s23 + $0x288] sm:$0xff] %v216_v17  ;;  %v280_v17 = vld [vmem:[%s994_s22 + $0x488] sm:$0xff] }
  0x7b   : > { %473 = vst [vmem:[%s1003_s23 + $0x290] sm:$0xff] %v217_v18  ;;  %v281_v18 = vld [vmem:[%s994_s22 + $0x490] sm:$0xff] }
  0x7c   : > { %474 = vst [vmem:[%s1003_s23 + $0x298] sm:$0xff] %v218_v19  ;;  %v282_v19 = vld [vmem:[%s994_s22 + $0x498] sm:$0xff] }
  0x7d   : > { %475 = vst [vmem:[%s1003_s23 + $0x2a0] sm:$0xff] %v219_v20  ;;  %v283_v20 = vld [vmem:[%s994_s22 + $0x4a0] sm:$0xff] }
  0x7e   : > { %476 = vst [vmem:[%s1003_s23 + $0x2a8] sm:$0xff] %v220_v21  ;;  %v284_v21 = vld [vmem:[%s994_s22 + $0x4a8] sm:$0xff] }
  0x7f   : > { %477 = vst [vmem:[%s1003_s23 + $0x2b0] sm:$0xff] %v221_v22  ;;  %v285_v22 = vld [vmem:[%s994_s22 + $0x4b0] sm:$0xff] }
  0x80   : > { %478 = vst [vmem:[%s1003_s23 + $0x2b8] sm:$0xff] %v222_v23  ;;  %v286_v23 = vld [vmem:[%s994_s22 + $0x4b8] sm:$0xff] }
  0x81   : > { %479 = vst [vmem:[%s1003_s23 + $0x2c0] sm:$0xff] %v223_v24  ;;  %v287_v24 = vld [vmem:[%s994_s22 + $0x4c0] sm:$0xff] }
  0x82   : > { %480 = vst [vmem:[%s1003_s23 + $0x2c8] sm:$0xff] %v224_v25  ;;  %v288_v25 = vld [vmem:[%s994_s22 + $0x4c8] sm:$0xff] }
  0x83   : > { %481 = vst [vmem:[%s1003_s23 + $0x2d0] sm:$0xff] %v225_v26  ;;  %v289_v26 = vld [vmem:[%s994_s22 + $0x4d0] sm:$0xff] }
  0x84   : > { %482 = vst [vmem:[%s1003_s23 + $0x2d8] sm:$0xff] %v226_v27  ;;  %v290_v27 = vld [vmem:[%s994_s22 + $0x4d8] sm:$0xff] }
  0x85   : > { %483 = vst [vmem:[%s1003_s23 + $0x2e0] sm:$0xff] %v227_v28  ;;  %v291_v28 = vld [vmem:[%s994_s22 + $0x4e0] sm:$0xff] }
  0x86   : > { %484 = vst [vmem:[%s1003_s23 + $0x2e8] sm:$0xff] %v228_v29  ;;  %v292_v29 = vld [vmem:[%s994_s22 + $0x4e8] sm:$0xff] }
  0x87   : > { %485 = vst [vmem:[%s1003_s23 + $0x2f0] sm:$0xff] %v229_v30  ;;  %v293_v30 = vld [vmem:[%s994_s22 + $0x4f0] sm:$0xff] }
  0x88   : > { %486 = vst [vmem:[%s1003_s23 + $0x2f8] sm:$0xff] %v230_v31  ;;  %v294_v31 = vld [vmem:[%s994_s22 + $0x4f8] sm:$0xff] }
  0x89   : > { %487 = vst [vmem:[%s1003_s23 + $0x300] sm:$0xff] %v231_v32  ;;  %v295_v32 = vld [vmem:[%s994_s22 + $0x500] sm:$0xff] }
  0x8a   : > { %488 = vst [vmem:[%s1003_s23 + $0x308] sm:$0xff] %v232_v33  ;;  %v296_v33 = vld [vmem:[%s994_s22 + $0x508] sm:$0xff] }
  0x8b   : > { %489 = vst [vmem:[%s1003_s23 + $0x310] sm:$0xff] %v233_v34  ;;  %v297_v34 = vld [vmem:[%s994_s22 + $0x510] sm:$0xff] }
  0x8c   : > { %490 = vst [vmem:[%s1003_s23 + $0x318] sm:$0xff] %v234_v35  ;;  %v298_v35 = vld [vmem:[%s994_s22 + $0x518] sm:$0xff] }
  0x8d   : > { %491 = vst [vmem:[%s1003_s23 + $0x320] sm:$0xff] %v235_v36  ;;  %v299_v36 = vld [vmem:[%s994_s22 + $0x520] sm:$0xff] }
  0x8e   : > { %492 = vst [vmem:[%s1003_s23 + $0x328] sm:$0xff] %v236_v37  ;;  %v300_v37 = vld [vmem:[%s994_s22 + $0x528] sm:$0xff] }
  0x8f   : > { %493 = vst [vmem:[%s1003_s23 + $0x330] sm:$0xff] %v237_v38  ;;  %v301_v38 = vld [vmem:[%s994_s22 + $0x530] sm:$0xff] }
  0x90   : > { %494 = vst [vmem:[%s1003_s23 + $0x338] sm:$0xff] %v238_v39  ;;  %v302_v39 = vld [vmem:[%s994_s22 + $0x538] sm:$0xff] }
  0x91   : > { %495 = vst [vmem:[%s1003_s23 + $0x340] sm:$0xff] %v239_v40  ;;  %v303_v40 = vld [vmem:[%s994_s22 + $0x540] sm:$0xff] }
  0x92   : > { %496 = vst [vmem:[%s1003_s23 + $0x348] sm:$0xff] %v240_v41  ;;  %v304_v41 = vld [vmem:[%s994_s22 + $0x548] sm:$0xff] }
  0x93   : > { %497 = vst [vmem:[%s1003_s23 + $0x350] sm:$0xff] %v241_v42  ;;  %v305_v42 = vld [vmem:[%s994_s22 + $0x550] sm:$0xff] }
  0x94   : > { %498 = vst [vmem:[%s1003_s23 + $0x358] sm:$0xff] %v242_v43  ;;  %v306_v43 = vld [vmem:[%s994_s22 + $0x558] sm:$0xff] }
  0x95   : > { %499 = vst [vmem:[%s1003_s23 + $0x360] sm:$0xff] %v243_v44  ;;  %v307_v44 = vld [vmem:[%s994_s22 + $0x560] sm:$0xff] }
  0x96   : > { %500 = vst [vmem:[%s1003_s23 + $0x368] sm:$0xff] %v244_v45  ;;  %v308_v45 = vld [vmem:[%s994_s22 + $0x568] sm:$0xff] }
  0x97   : > { %501 = vst [vmem:[%s1003_s23 + $0x370] sm:$0xff] %v245_v46  ;;  %v309_v46 = vld [vmem:[%s994_s22 + $0x570] sm:$0xff] }
  0x98   : > { %502 = vst [vmem:[%s1003_s23 + $0x378] sm:$0xff] %v246_v47  ;;  %v310_v47 = vld [vmem:[%s994_s22 + $0x578] sm:$0xff] }
  0x99   : > { %503 = vst [vmem:[%s1003_s23 + $0x380] sm:$0xff] %v247_v48  ;;  %v311_v48 = vld [vmem:[%s994_s22 + $0x580] sm:$0xff] }
  0x9a   : > { %504 = vst [vmem:[%s1003_s23 + $0x388] sm:$0xff] %v248_v49  ;;  %v312_v49 = vld [vmem:[%s994_s22 + $0x588] sm:$0xff] }
  0x9b   : > { %505 = vst [vmem:[%s1003_s23 + $0x390] sm:$0xff] %v249_v50  ;;  %v313_v50 = vld [vmem:[%s994_s22 + $0x590] sm:$0xff] }
  0x9c   : > { %506 = vst [vmem:[%s1003_s23 + $0x398] sm:$0xff] %v250_v51  ;;  %v314_v51 = vld [vmem:[%s994_s22 + $0x598] sm:$0xff] }
  0x9d   : > { %507 = vst [vmem:[%s1003_s23 + $0x3a0] sm:$0xff] %v251_v52  ;;  %v315_v52 = vld [vmem:[%s994_s22 + $0x5a0] sm:$0xff] }
  0x9e   : > { %508 = vst [vmem:[%s1003_s23 + $0x3a8] sm:$0xff] %v252_v53  ;;  %v316_v53 = vld [vmem:[%s994_s22 + $0x5a8] sm:$0xff] }
  0x9f   : > { %509 = vst [vmem:[%s1003_s23 + $0x3b0] sm:$0xff] %v253_v54  ;;  %v317_v54 = vld [vmem:[%s994_s22 + $0x5b0] sm:$0xff] }
  0xa0   : > { %510 = vst [vmem:[%s1003_s23 + $0x3b8] sm:$0xff] %v254_v55  ;;  %v318_v55 = vld [vmem:[%s994_s22 + $0x5b8] sm:$0xff] }
  0xa1   : > { %511 = vst [vmem:[%s1003_s23 + $0x3c0] sm:$0xff] %v255_v56  ;;  %v319_v56 = vld [vmem:[%s994_s22 + $0x5c0] sm:$0xff] }
  0xa2   : > { %512 = vst [vmem:[%s1003_s23 + $0x3c8] sm:$0xff] %v256_v57  ;;  %v320_v57 = vld [vmem:[%s994_s22 + $0x5c8] sm:$0xff] }
  0xa3   : > { %513 = vst [vmem:[%s1003_s23 + $0x3d0] sm:$0xff] %v257_v58  ;;  %v321_v58 = vld [vmem:[%s994_s22 + $0x5d0] sm:$0xff] }
  0xa4   : > { %514 = vst [vmem:[%s1003_s23 + $0x3d8] sm:$0xff] %v258_v59  ;;  %v322_v59 = vld [vmem:[%s994_s22 + $0x5d8] sm:$0xff] }
  0xa5   : > { %515 = vst [vmem:[%s1003_s23 + $0x3e0] sm:$0xff] %v259_v60  ;;  %v323_v60 = vld [vmem:[%s994_s22 + $0x5e0] sm:$0xff] }
  0xa6   : > { %516 = vst [vmem:[%s1003_s23 + $0x3e8] sm:$0xff] %v260_v61  ;;  %v324_v61 = vld [vmem:[%s994_s22 + $0x5e8] sm:$0xff] }
  0xa7   : > { %517 = vst [vmem:[%s1003_s23 + $0x3f0] sm:$0xff] %v261_v62  ;;  %v325_v62 = vld [vmem:[%s994_s22 + $0x5f0] sm:$0xff] }
  0xa8   : > { %518 = vst [vmem:[%s1003_s23 + $0x3f8] sm:$0xff] %v262_v63  ;;  %v326_v63 = vld [vmem:[%s994_s22 + $0x5f8] sm:$0xff] }
  0xa9   : > { %519 = vst [vmem:[%s1003_s23 + $0x400] sm:$0xff] %v263_v0  ;;  %v327_v0 = vld [vmem:[%s994_s22 + $0x600] sm:$0xff] }
  0xaa   : > { %520 = vst [vmem:[%s1003_s23 + $0x408] sm:$0xff] %v264_v1  ;;  %v328_v1 = vld [vmem:[%s994_s22 + $0x608] sm:$0xff] }
  0xab   : > { %521 = vst [vmem:[%s1003_s23 + $0x410] sm:$0xff] %v265_v2  ;;  %v329_v2 = vld [vmem:[%s994_s22 + $0x610] sm:$0xff] }
  0xac   : > { %522 = vst [vmem:[%s1003_s23 + $0x418] sm:$0xff] %v266_v3  ;;  %v330_v3 = vld [vmem:[%s994_s22 + $0x618] sm:$0xff] }
  0xad   : > { %523 = vst [vmem:[%s1003_s23 + $0x420] sm:$0xff] %v267_v4  ;;  %v331_v4 = vld [vmem:[%s994_s22 + $0x620] sm:$0xff] }
  0xae   : > { %524 = vst [vmem:[%s1003_s23 + $0x428] sm:$0xff] %v268_v5  ;;  %v332_v5 = vld [vmem:[%s994_s22 + $0x628] sm:$0xff] }
  0xaf   : > { %525 = vst [vmem:[%s1003_s23 + $0x430] sm:$0xff] %v269_v6  ;;  %v333_v6 = vld [vmem:[%s994_s22 + $0x630] sm:$0xff] }
  0xb0   : > { %526 = vst [vmem:[%s1003_s23 + $0x438] sm:$0xff] %v270_v7  ;;  %v334_v7 = vld [vmem:[%s994_s22 + $0x638] sm:$0xff] }
  0xb1   : > { %527 = vst [vmem:[%s1003_s23 + $0x440] sm:$0xff] %v271_v8  ;;  %v335_v8 = vld [vmem:[%s994_s22 + $0x640] sm:$0xff] }
  0xb2   : > { %528 = vst [vmem:[%s1003_s23 + $0x448] sm:$0xff] %v272_v9  ;;  %v336_v9 = vld [vmem:[%s994_s22 + $0x648] sm:$0xff] }
  0xb3   : > { %529 = vst [vmem:[%s1003_s23 + $0x450] sm:$0xff] %v273_v10  ;;  %v337_v10 = vld [vmem:[%s994_s22 + $0x650] sm:$0xff] }
  0xb4   : > { %530 = vst [vmem:[%s1003_s23 + $0x458] sm:$0xff] %v274_v11  ;;  %v338_v11 = vld [vmem:[%s994_s22 + $0x658] sm:$0xff] }
  0xb5   : > { %531 = vst [vmem:[%s1003_s23 + $0x460] sm:$0xff] %v275_v12  ;;  %v339_v12 = vld [vmem:[%s994_s22 + $0x660] sm:$0xff] }
  0xb6   : > { %532 = vst [vmem:[%s1003_s23 + $0x468] sm:$0xff] %v276_v13  ;;  %v340_v13 = vld [vmem:[%s994_s22 + $0x668] sm:$0xff] }
  0xb7   : > { %533 = vst [vmem:[%s1003_s23 + $0x470] sm:$0xff] %v277_v14  ;;  %v341_v14 = vld [vmem:[%s994_s22 + $0x670] sm:$0xff] }
  0xb8   : > { %534 = vst [vmem:[%s1003_s23 + $0x478] sm:$0xff] %v278_v15  ;;  %v342_v15 = vld [vmem:[%s994_s22 + $0x678] sm:$0xff] }
  0xb9   : > { %535 = vst [vmem:[%s1003_s23 + $0x480] sm:$0xff] %v279_v16  ;;  %v343_v16 = vld [vmem:[%s994_s22 + $0x680] sm:$0xff] }
  0xba   : > { %536 = vst [vmem:[%s1003_s23 + $0x488] sm:$0xff] %v280_v17  ;;  %v344_v17 = vld [vmem:[%s994_s22 + $0x688] sm:$0xff] }
  0xbb   : > { %537 = vst [vmem:[%s1003_s23 + $0x490] sm:$0xff] %v281_v18  ;;  %v345_v18 = vld [vmem:[%s994_s22 + $0x690] sm:$0xff] }
  0xbc   : > { %538 = vst [vmem:[%s1003_s23 + $0x498] sm:$0xff] %v282_v19  ;;  %v346_v19 = vld [vmem:[%s994_s22 + $0x698] sm:$0xff] }
  0xbd   : > { %539 = vst [vmem:[%s1003_s23 + $0x4a0] sm:$0xff] %v283_v20  ;;  %v347_v20 = vld [vmem:[%s994_s22 + $0x6a0] sm:$0xff] }
  0xbe   : > { %540 = vst [vmem:[%s1003_s23 + $0x4a8] sm:$0xff] %v284_v21  ;;  %v348_v21 = vld [vmem:[%s994_s22 + $0x6a8] sm:$0xff] }
  0xbf   : > { %541 = vst [vmem:[%s1003_s23 + $0x4b0] sm:$0xff] %v285_v22  ;;  %v349_v22 = vld [vmem:[%s994_s22 + $0x6b0] sm:$0xff] }
  0xc0   : > { %542 = vst [vmem:[%s1003_s23 + $0x4b8] sm:$0xff] %v286_v23  ;;  %v350_v23 = vld [vmem:[%s994_s22 + $0x6b8] sm:$0xff] }
  0xc1   : > { %543 = vst [vmem:[%s1003_s23 + $0x4c0] sm:$0xff] %v287_v24  ;;  %v351_v24 = vld [vmem:[%s994_s22 + $0x6c0] sm:$0xff] }
  0xc2   : > { %544 = vst [vmem:[%s1003_s23 + $0x4c8] sm:$0xff] %v288_v25  ;;  %v352_v25 = vld [vmem:[%s994_s22 + $0x6c8] sm:$0xff] }
  0xc3   : > { %545 = vst [vmem:[%s1003_s23 + $0x4d0] sm:$0xff] %v289_v26  ;;  %v353_v26 = vld [vmem:[%s994_s22 + $0x6d0] sm:$0xff] }
  0xc4   : > { %546 = vst [vmem:[%s1003_s23 + $0x4d8] sm:$0xff] %v290_v27  ;;  %v354_v27 = vld [vmem:[%s994_s22 + $0x6d8] sm:$0xff] }
  0xc5   : > { %547 = vst [vmem:[%s1003_s23 + $0x4e0] sm:$0xff] %v291_v28  ;;  %v355_v28 = vld [vmem:[%s994_s22 + $0x6e0] sm:$0xff] }
  0xc6   : > { %548 = vst [vmem:[%s1003_s23 + $0x4e8] sm:$0xff] %v292_v29  ;;  %v356_v29 = vld [vmem:[%s994_s22 + $0x6e8] sm:$0xff] }
  0xc7   : > { %549 = vst [vmem:[%s1003_s23 + $0x4f0] sm:$0xff] %v293_v30  ;;  %v357_v30 = vld [vmem:[%s994_s22 + $0x6f0] sm:$0xff] }
  0xc8   : > { %550 = vst [vmem:[%s1003_s23 + $0x4f8] sm:$0xff] %v294_v31  ;;  %v358_v31 = vld [vmem:[%s994_s22 + $0x6f8] sm:$0xff] }
  0xc9   : > { %551 = vst [vmem:[%s1003_s23 + $0x500] sm:$0xff] %v295_v32  ;;  %v359_v32 = vld [vmem:[%s994_s22 + $0x700] sm:$0xff] }
  0xca   : > { %552 = vst [vmem:[%s1003_s23 + $0x508] sm:$0xff] %v296_v33  ;;  %v360_v33 = vld [vmem:[%s994_s22 + $0x708] sm:$0xff] }
  0xcb   : > { %553 = vst [vmem:[%s1003_s23 + $0x510] sm:$0xff] %v297_v34  ;;  %v361_v34 = vld [vmem:[%s994_s22 + $0x710] sm:$0xff] }
  0xcc   : > { %554 = vst [vmem:[%s1003_s23 + $0x518] sm:$0xff] %v298_v35  ;;  %v362_v35 = vld [vmem:[%s994_s22 + $0x718] sm:$0xff] }
  0xcd   : > { %555 = vst [vmem:[%s1003_s23 + $0x520] sm:$0xff] %v299_v36  ;;  %v363_v36 = vld [vmem:[%s994_s22 + $0x720] sm:$0xff] }
  0xce   : > { %556 = vst [vmem:[%s1003_s23 + $0x528] sm:$0xff] %v300_v37  ;;  %v364_v37 = vld [vmem:[%s994_s22 + $0x728] sm:$0xff] }
  0xcf   : > { %557 = vst [vmem:[%s1003_s23 + $0x530] sm:$0xff] %v301_v38  ;;  %v365_v38 = vld [vmem:[%s994_s22 + $0x730] sm:$0xff] }
  0xd0   : > { %558 = vst [vmem:[%s1003_s23 + $0x538] sm:$0xff] %v302_v39  ;;  %v366_v39 = vld [vmem:[%s994_s22 + $0x738] sm:$0xff] }
  0xd1   : > { %559 = vst [vmem:[%s1003_s23 + $0x540] sm:$0xff] %v303_v40  ;;  %v367_v40 = vld [vmem:[%s994_s22 + $0x740] sm:$0xff] }
  0xd2   : > { %560 = vst [vmem:[%s1003_s23 + $0x548] sm:$0xff] %v304_v41  ;;  %v368_v41 = vld [vmem:[%s994_s22 + $0x748] sm:$0xff] }
  0xd3   : > { %561 = vst [vmem:[%s1003_s23 + $0x550] sm:$0xff] %v305_v42  ;;  %v369_v42 = vld [vmem:[%s994_s22 + $0x750] sm:$0xff] }
  0xd4   : > { %562 = vst [vmem:[%s1003_s23 + $0x558] sm:$0xff] %v306_v43  ;;  %v370_v43 = vld [vmem:[%s994_s22 + $0x758] sm:$0xff] }
  0xd5   : > { %563 = vst [vmem:[%s1003_s23 + $0x560] sm:$0xff] %v307_v44  ;;  %v371_v44 = vld [vmem:[%s994_s22 + $0x760] sm:$0xff] }
  0xd6   : > { %564 = vst [vmem:[%s1003_s23 + $0x568] sm:$0xff] %v308_v45  ;;  %v372_v45 = vld [vmem:[%s994_s22 + $0x768] sm:$0xff] }
  0xd7   : > { %565 = vst [vmem:[%s1003_s23 + $0x570] sm:$0xff] %v309_v46  ;;  %v373_v46 = vld [vmem:[%s994_s22 + $0x770] sm:$0xff] }
  0xd8   : > { %566 = vst [vmem:[%s1003_s23 + $0x578] sm:$0xff] %v310_v47  ;;  %v374_v47 = vld [vmem:[%s994_s22 + $0x778] sm:$0xff] }
  0xd9   : > { %567 = vst [vmem:[%s1003_s23 + $0x580] sm:$0xff] %v311_v48  ;;  %v375_v48 = vld [vmem:[%s994_s22 + $0x780] sm:$0xff] }
  0xda   : > { %568 = vst [vmem:[%s1003_s23 + $0x588] sm:$0xff] %v312_v49  ;;  %v376_v49 = vld [vmem:[%s994_s22 + $0x788] sm:$0xff] }
  0xdb   : > { %569 = vst [vmem:[%s1003_s23 + $0x590] sm:$0xff] %v313_v50  ;;  %v377_v50 = vld [vmem:[%s994_s22 + $0x790] sm:$0xff] }
  0xdc   : > { %570 = vst [vmem:[%s1003_s23 + $0x598] sm:$0xff] %v314_v51  ;;  %v378_v51 = vld [vmem:[%s994_s22 + $0x798] sm:$0xff] }
  0xdd   : > { %571 = vst [vmem:[%s1003_s23 + $0x5a0] sm:$0xff] %v315_v52  ;;  %v379_v52 = vld [vmem:[%s994_s22 + $0x7a0] sm:$0xff] }
  0xde   : > { %572 = vst [vmem:[%s1003_s23 + $0x5a8] sm:$0xff] %v316_v53  ;;  %v380_v53 = vld [vmem:[%s994_s22 + $0x7a8] sm:$0xff] }
  0xdf   : > { %573 = vst [vmem:[%s1003_s23 + $0x5b0] sm:$0xff] %v317_v54  ;;  %v381_v54 = vld [vmem:[%s994_s22 + $0x7b0] sm:$0xff] }
  0xe0   : > { %574 = vst [vmem:[%s1003_s23 + $0x5b8] sm:$0xff] %v318_v55  ;;  %v382_v55 = vld [vmem:[%s994_s22 + $0x7b8] sm:$0xff] }
  0xe1   : > { %575 = vst [vmem:[%s1003_s23 + $0x5c0] sm:$0xff] %v319_v56  ;;  %v383_v56 = vld [vmem:[%s994_s22 + $0x7c0] sm:$0xff] }
  0xe2   : > { %576 = vst [vmem:[%s1003_s23 + $0x5c8] sm:$0xff] %v320_v57  ;;  %v384_v57 = vld [vmem:[%s994_s22 + $0x7c8] sm:$0xff] }
  0xe3   : > { %577 = vst [vmem:[%s1003_s23 + $0x5d0] sm:$0xff] %v321_v58  ;;  %v385_v58 = vld [vmem:[%s994_s22 + $0x7d0] sm:$0xff] }
  0xe4   : > { %578 = vst [vmem:[%s1003_s23 + $0x5d8] sm:$0xff] %v322_v59  ;;  %v386_v59 = vld [vmem:[%s994_s22 + $0x7d8] sm:$0xff] }
  0xe5   : > { %579 = vst [vmem:[%s1003_s23 + $0x5e0] sm:$0xff] %v323_v60  ;;  %v387_v60 = vld [vmem:[%s994_s22 + $0x7e0] sm:$0xff] }
  0xe6   : > { %580 = vst [vmem:[%s1003_s23 + $0x5e8] sm:$0xff] %v324_v61  ;;  %v388_v61 = vld [vmem:[%s994_s22 + $0x7e8] sm:$0xff] }
  0xe7   : > { %581 = vst [vmem:[%s1003_s23 + $0x5f0] sm:$0xff] %v325_v62  ;;  %v389_v62 = vld [vmem:[%s994_s22 + $0x7f0] sm:$0xff] }
  0xe8   : > { %582 = vst [vmem:[%s1003_s23 + $0x5f8] sm:$0xff] %v326_v63  ;;  %v390_v63 = vld [vmem:[%s994_s22 + $0x7f8] sm:$0xff] }
  0xe9   : > { %583 = vst [vmem:[%s1003_s23 + $0x600] sm:$0xff] %v327_v0 }
  0xea   : > { %584 = vst [vmem:[%s1003_s23 + $0x608] sm:$0xff] %v328_v1 }
  0xeb   : > { %585 = vst [vmem:[%s1003_s23 + $0x610] sm:$0xff] %v329_v2 }
  0xec   : > { %586 = vst [vmem:[%s1003_s23 + $0x618] sm:$0xff] %v330_v3 }
  0xed   : > { %587 = vst [vmem:[%s1003_s23 + $0x620] sm:$0xff] %v331_v4 }
  0xee   : > { %588 = vst [vmem:[%s1003_s23 + $0x628] sm:$0xff] %v332_v5 }
  0xef   : > { %589 = vst [vmem:[%s1003_s23 + $0x630] sm:$0xff] %v333_v6 }
  0xf0   : > { %590 = vst [vmem:[%s1003_s23 + $0x638] sm:$0xff] %v334_v7 }
  0xf1   : > { %591 = vst [vmem:[%s1003_s23 + $0x640] sm:$0xff] %v335_v8 }
  0xf2   : > { %592 = vst [vmem:[%s1003_s23 + $0x648] sm:$0xff] %v336_v9 }
  0xf3   : > { %593 = vst [vmem:[%s1003_s23 + $0x650] sm:$0xff] %v337_v10 }
  0xf4   : > { %594 = vst [vmem:[%s1003_s23 + $0x658] sm:$0xff] %v338_v11 }
  0xf5   : > { %595 = vst [vmem:[%s1003_s23 + $0x660] sm:$0xff] %v339_v12 }
  0xf6   : > { %596 = vst [vmem:[%s1003_s23 + $0x668] sm:$0xff] %v340_v13 }
  0xf7   : > { %597 = vst [vmem:[%s1003_s23 + $0x670] sm:$0xff] %v341_v14 }
  0xf8   : > { %598 = vst [vmem:[%s1003_s23 + $0x678] sm:$0xff] %v342_v15 }
  0xf9   : > { %599 = vst [vmem:[%s1003_s23 + $0x680] sm:$0xff] %v343_v16 }
  0xfa   : > { %600 = vst [vmem:[%s1003_s23 + $0x688] sm:$0xff] %v344_v17 }
  0xfb   : > { %601 = vst [vmem:[%s1003_s23 + $0x690] sm:$0xff] %v345_v18 }
  0xfc   : > { %602 = vst [vmem:[%s1003_s23 + $0x698] sm:$0xff] %v346_v19 }
  0xfd   : > { %603 = vst [vmem:[%s1003_s23 + $0x6a0] sm:$0xff] %v347_v20 }
  0xfe   : > { %604 = vst [vmem:[%s1003_s23 + $0x6a8] sm:$0xff] %v348_v21 }
  0xff   : > { %605 = vst [vmem:[%s1003_s23 + $0x6b0] sm:$0xff] %v349_v22 }
 0x100   : > { %606 = vst [vmem:[%s1003_s23 + $0x6b8] sm:$0xff] %v350_v23 }
 0x101   : > { %607 = vst [vmem:[%s1003_s23 + $0x6c0] sm:$0xff] %v351_v24 }
 0x102   : > { %608 = vst [vmem:[%s1003_s23 + $0x6c8] sm:$0xff] %v352_v25 }
 0x103   : > { %609 = vst [vmem:[%s1003_s23 + $0x6d0] sm:$0xff] %v353_v26 }
 0x104   : > { %610 = vst [vmem:[%s1003_s23 + $0x6d8] sm:$0xff] %v354_v27 }
 0x105   : > { %611 = vst [vmem:[%s1003_s23 + $0x6e0] sm:$0xff] %v355_v28 }
 0x106   : > { %612 = vst [vmem:[%s1003_s23 + $0x6e8] sm:$0xff] %v356_v29 }
 0x107   : > { %613 = vst [vmem:[%s1003_s23 + $0x6f0] sm:$0xff] %v357_v30 }
 0x108   : > { %614 = vst [vmem:[%s1003_s23 + $0x6f8] sm:$0xff] %v358_v31 }
 0x109   : > { %615 = vst [vmem:[%s1003_s23 + $0x700] sm:$0xff] %v359_v32 }
 0x10a   : > { %616 = vst [vmem:[%s1003_s23 + $0x708] sm:$0xff] %v360_v33 }
 0x10b   : > { %617 = vst [vmem:[%s1003_s23 + $0x710] sm:$0xff] %v361_v34 }
 0x10c   : > { %618 = vst [vmem:[%s1003_s23 + $0x718] sm:$0xff] %v362_v35 }
 0x10d   : > { %619 = vst [vmem:[%s1003_s23 + $0x720] sm:$0xff] %v363_v36 }
 0x10e   : > { %620 = vst [vmem:[%s1003_s23 + $0x728] sm:$0xff] %v364_v37 }
 0x10f   : > { %621 = vst [vmem:[%s1003_s23 + $0x730] sm:$0xff] %v365_v38 }
 0x110   : > { %622 = vst [vmem:[%s1003_s23 + $0x738] sm:$0xff] %v366_v39 }
 0x111   : > { %623 = vst [vmem:[%s1003_s23 + $0x740] sm:$0xff] %v367_v40 }
 0x112   : > { %624 = vst [vmem:[%s1003_s23 + $0x748] sm:$0xff] %v368_v41 }
 0x113   : > { %625 = vst [vmem:[%s1003_s23 + $0x750] sm:$0xff] %v369_v42 }
 0x114   : > { %626 = vst [vmem:[%s1003_s23 + $0x758] sm:$0xff] %v370_v43 }
 0x115   : > { %627 = vst [vmem:[%s1003_s23 + $0x760] sm:$0xff] %v371_v44 }
 0x116   : > { %628 = vst [vmem:[%s1003_s23 + $0x768] sm:$0xff] %v372_v45 }
 0x117   : > { %629 = vst [vmem:[%s1003_s23 + $0x770] sm:$0xff] %v373_v46 }
 0x118   : > { %630 = vst [vmem:[%s1003_s23 + $0x778] sm:$0xff] %v374_v47 }
 0x119   : > { %631 = vst [vmem:[%s1003_s23 + $0x780] sm:$0xff] %v375_v48 }
 0x11a   : > { %632 = vst [vmem:[%s1003_s23 + $0x788] sm:$0xff] %v376_v49 }
 0x11b   : > { %633 = vst [vmem:[%s1003_s23 + $0x790] sm:$0xff] %v377_v50 }
 0x11c   : > { %634 = vst [vmem:[%s1003_s23 + $0x798] sm:$0xff] %v378_v51 }
 0x11d   : > { %635 = vst [vmem:[%s1003_s23 + $0x7a0] sm:$0xff] %v379_v52 }
 0x11e   : > { %636 = vst [vmem:[%s1003_s23 + $0x7a8] sm:$0xff] %v380_v53 }
 0x11f   : > { %637 = vst [vmem:[%s1003_s23 + $0x7b0] sm:$0xff] %v381_v54 }
 0x120   : > { %638 = vst [vmem:[%s1003_s23 + $0x7b8] sm:$0xff] %v382_v55 }
 0x121   : > { %639 = vst [vmem:[%s1003_s23 + $0x7c0] sm:$0xff] %v383_v56 }
 0x122   : > { %640 = vst [vmem:[%s1003_s23 + $0x7c8] sm:$0xff] %v384_v57 }
 0x123   : > { %641 = vst [vmem:[%s1003_s23 + $0x7d0] sm:$0xff] %v385_v58 }
 0x124   : > { %642 = vst [vmem:[%s1003_s23 + $0x7d8] sm:$0xff] %v386_v59 }
 0x125   : > { %643 = vst [vmem:[%s1003_s23 + $0x7e0] sm:$0xff] %v387_v60 }
 0x126   : > { %644 = vst [vmem:[%s1003_s23 + $0x7e8] sm:$0xff] %v388_v61 }
 0x127   : > { %645 = vst [vmem:[%s1003_s23 + $0x7f0] sm:$0xff] %v389_v62 }
 0x128   : > { %646 = vst [vmem:[%s1003_s23 + $0x7f8] sm:$0xff] %v390_v63 }
 0x129   : > { %853 = shalt.err (!%p850_p4)
}
 0x12a   : > { %752 = dma.vmem_to_hbm [thread:$0]  (%p954_p11), %s662_s10, 32768, %s664_s27, %s648_s28  }
 0x12b PF: > { %s675_s13 = sand.u32 1, %s880_s6   ;;  %p1555_p7 = scmp.ge.s32.totalorder %s892_s9, 2 }
 0x12c   : > { %s676_s14 = scalar_lea.sflag [#allocation4], %s675_s13 }
 0x12d   : > { %p759_p5 = pnand %p1555_p7, %p958_p12 }
 0x12f   : > { %p760_p8 = pneg %p759_p5 }
 0x131   : > { %875 = dma.done.wait (%p760_p8), %s676_s14, 32768  }
 0x132   : > { %877 = vsyncadd (%p760_p8), %s676_s14, 4294934528  ;;  %p14_p10 = scmp.ge.s32.totalorder %s929_s12, 4   ;;  %s1556_s6 = smov %s884_s7 }
 0x133   : > { %s1557_s7 = smov %s888_s8  ;;  %s1558_s8 = smov %s941_s15 }
 0x134   : > { %s1559_s9 = smov %s929_s12  ;;  %16 = sbr.rel (!%p14_p10) target bundleno = 5 (0x5), region = 69 }
 0x139   :  { %682 = vsyncpa [#allocation3], 1 }
 0x13a   :  { %684 = vsyncpa [#allocation3 + $0x1], 1 }
 0x13b   :  { %685 = vsyncpa [#allocation4], 1 }
 0x13c   :  { %687 = vsyncpa [#allocation4 + $0x1], 1 }

</bundles_post_ra>
